<compile_context>
chip_gen: v7x
topology: tpu7x:2x2x1
jax: 0.10.0
libtpu: 0.0.40
codegen_flags: <defaults>
</compile_context>

<pallas_src>
import functools
import math

import jax
import jax.numpy as jnp
from jax import lax
from jax.experimental import pallas as pl
from jax.experimental.pallas import tpu as pltpu


# ---------------------------------------------------------------------------
# Helpers
# ---------------------------------------------------------------------------
def _round_up(n, m):
    return ((n + m - 1) // m) * m


def _vmem_capacity_bytes():
    """Physical VMEM per core; falls back to the v7x 64 MiB floor."""
    try:
        info = pltpu.get_tpu_info()
        for name in ("vmem_capacity_bytes", "vmem_bytes", "vmem_size_bytes"):
            v = getattr(info, name, None)
            if v:
                return int(v)
    except Exception:
        pass
    return 64 * 1024 * 1024


def _vmem_budget_bytes():
    # ~75% of physical VMEM: 96 MiB on v5e/v6e (128 MiB), 48 MiB on v7x (64 MiB).
    cap = _vmem_capacity_bytes()
    return int(max(32 << 20, min(int(cap * 0.75), 112 << 20)))


def _pick_bk(nk, heads, dh, dq, bq, itemsize, budget_bytes):
    """Largest 16-aligned KV block whose double-buffered K/V + scratch fit."""
    dh_p = _round_up(dh, 128)
    dq_p = _round_up(dq, 128)
    fixed = 2 * 2 * bq * dq_p * itemsize                          # x + out blocks (2 bufs)
    fixed += 2 * 2 * heads * _round_up(dq, 8) * dh_p * itemsize   # wq + wo blocks
    fixed += heads * bq * dh_p * (itemsize + 4)                   # q scratch + f32 acc
    fixed += 2 * heads * bq * 128 * 4                             # m + l (lane padded)
    per_kv_row = 2 * 2 * heads * dh_p * itemsize                  # K + V, double-buffered
    cap = max((budget_bytes - fixed) // per_kv_row, 16)
    cap = max(16, (cap // 16) * 16)
    return int(min(_round_up(nk, 16), cap, 1024))


# ---------------------------------------------------------------------------
# Pallas kernels
# ---------------------------------------------------------------------------
def _attn_small_kernel(x_ref, c_ref, wq_ref, wk_ref, wv_ref, wo_ref, bo_ref,
                       o_ref, *, heads, nk_valid):
    # Fully fused short-context path: Q/K/V projections + softmax + per-head
    # output projection in one kernel.  Grid = (B, Nq_blocks).
    xb = x_ref[0]                           # (bq, Dq)
    cb = c_ref[0]                           # (Nk_pad, Dc)
    nk_pad = cb.shape[0]
    need_mask = nk_pad != nk_valid
    if need_mask:
        col = lax.broadcasted_iota(jnp.int32, (1, nk_pad), 1)
        kmask = col < nk_valid

    bq = xb.shape[0]
    dq_out = o_ref.shape[2]
    res = jnp.zeros((bq, dq_out), jnp.float32)
    for h in range(heads):                  # static unroll; leading-axis heads
        q_h = jnp.dot(xb, wq_ref[h],        # scale already folded into wq
                      preferred_element_type=jnp.float32).astype(xb.dtype)
        k_h = jnp.dot(cb, wk_ref[h],
                      preferred_element_type=jnp.float32).astype(cb.dtype)
        v_h = jnp.dot(cb, wv_ref[h],
                      preferred_element_type=jnp.float32).astype(cb.dtype)
        # Contract the minor dims directly -- no explicit K transpose.
        s = lax.dot_general(q_h, k_h, (((1,), (1,)), ((), ())),
                            preferred_element_type=jnp.float32)   # (bq, Nk_pad)
        if need_mask:
            s = jnp.where(kmask, s, -jnp.inf)
        m = jnp.max(s, axis=-1, keepdims=True)
        p = jnp.exp(s - m)
        l = jnp.sum(p, axis=-1, keepdims=True)
        o_h = jnp.dot(p.astype(v_h.dtype), v_h,
                      preferred_element_type=jnp.float32)          # (bq, dh)
        o_h = o_h * pl.reciprocal(l)                               # exact
        res = res + jnp.dot(o_h.astype(wo_ref.dtype), wo_ref[h],
                            preferred_element_type=jnp.float32)    # (bq, Dq)
    o_ref[0] = (res + bo_ref[...].astype(jnp.float32)).astype(o_ref.dtype)


def _kv_proj_kernel(c_ref, wk_ref, wv_ref, k_ref, v_ref, *, heads):
    # context is read from HBM once; K and V are emitted head-leading so the
    # attention kernel indexes heads on a leading axis (no lane extracts).
    c = c_ref[0]                            # (bm, Dc)
    for h in range(heads):
        k_ref[0, h] = jnp.dot(c, wk_ref[h],
                              preferred_element_type=jnp.float32).astype(k_ref.dtype)
        v_ref[0, h] = jnp.dot(c, wv_ref[h],
                              preferred_element_type=jnp.float32).astype(v_ref.dtype)


def _attn_flash_kernel(x_ref, k_ref, v_ref, wq_ref, wo_ref, bo_ref, o_ref,
                       q_scr, acc_scr, m_scr, l_scr, *, heads, nk_valid, bk):
    # Grid = (B, Nq_blocks, Nk_blocks); KV axis last ("arbitrary").
    ki = pl.program_id(2)

    @pl.when(ki == 0)
    def _init():
        # Fused Q projection: once per q block, straight into VMEM scratch.
        xb = x_ref[0]
        for h in range(heads):
            q_scr[h] = jnp.dot(
                xb, wq_ref[h],
                preferred_element_type=jnp.float32).astype(q_scr.dtype)
        m_scr[...] = jnp.full(m_scr.shape, -jnp.inf, dtype=jnp.float32)
        l_scr[...] = jnp.zeros(l_scr.shape, dtype=jnp.float32)
        acc_scr[...] = jnp.zeros(acc_scr.shape, dtype=jnp.float32)

    need_mask = (nk_valid % bk) != 0        # static (trace-time) decision
    if need_mask:
        col = ki * bk + lax.broadcasted_iota(jnp.int32, (1, bk), 1)
        kmask = col < nk_valid

    for h in range(heads):                  # static unroll; leading-axis heads
        q_h = q_scr[h]                      # (bq, dh), storage dtype, scale folded
        k_h = k_ref[0, h]                   # (bk, dh)
        v_h = v_ref[0, h]                   # (bk, dh)
        s = lax.dot_general(q_h, k_h, (((1,), (1,)), ((), ())),
                            preferred_element_type=jnp.float32)   # (bq, bk)
        if need_mask:
            s = jnp.where(kmask, s, -jnp.inf)
        m_prev = m_scr[h]                                          # (bq, 1)
        m_new = jnp.maximum(m_prev, jnp.max(s, axis=-1, keepdims=True))
        alpha = jnp.exp(m_prev - m_new)
        p = jnp.exp(s - m_new)
        l_scr[h] = alpha * l_scr[h] + jnp.sum(p, axis=-1, keepdims=True)
        acc_scr[h] = alpha * acc_scr[h] + jnp.dot(
            p.astype(v_h.dtype), v_h, preferred_element_type=jnp.float32)
        m_scr[h] = m_new

    @pl.when(ki == pl.num_programs(2) - 1)
    def _finalize():
        # Per-head normalize + per-head output-projection sum (no lane-concat
        # head merge); only the final lane-dense (bq, Dq) block is stored.
        bq = o_ref.shape[1]
        dq_out = o_ref.shape[2]
        res = jnp.zeros((bq, dq_out), jnp.float32)
        for h in range(heads):
            o_h = (acc_scr[h] * pl.reciprocal(l_scr[h])).astype(wo_ref.dtype)
            res = res + jnp.dot(o_h, wo_ref[h],
                                preferred_element_type=jnp.float32)
        o_ref[0] = (res + bo_ref[...].astype(jnp.float32)).astype(o_ref.dtype)
        # Dropout(p=0.0) is identity in eval mode -> nothing to do.


# ---------------------------------------------------------------------------
# pallas_call wrappers
# ---------------------------------------------------------------------------
def _pallas_attn_small(x, ctx, wq_h, wk_h, wv_h, wo_h, bo, *,
                       heads, nk_valid, bq, vmem_limit):
    B, nq_pad, dq = x.shape
    _, nk_pad, dc = ctx.shape
    dh = wq_h.shape[2]
    kernel = functools.partial(_attn_small_kernel, heads=heads,
                               nk_valid=nk_valid)
    return pl.pallas_call(
        kernel,
        out_shape=jax.ShapeDtypeStruct((B, nq_pad, dq), x.dtype),
        grid_spec=pltpu.PrefetchScalarGridSpec(
            num_scalar_prefetch=0,
            grid=(B, nq_pad // bq),
            in_specs=[
                pl.BlockSpec((1, bq, dq), lambda b, qi: (b, qi, 0)),
                pl.BlockSpec((1, nk_pad, dc), lambda b, qi: (b, 0, 0)),
                pl.BlockSpec((heads, dq, dh), lambda b, qi: (0, 0, 0)),
                pl.BlockSpec((heads, dc, dh), lambda b, qi: (0, 0, 0)),
                pl.BlockSpec((heads, dc, dh), lambda b, qi: (0, 0, 0)),
                pl.BlockSpec((heads, dh, dq), lambda b, qi: (0, 0, 0)),
                pl.BlockSpec((1, dq), lambda b, qi: (0, 0)),
            ],
            out_specs=pl.BlockSpec((1, bq, dq), lambda b, qi: (b, qi, 0)),
        ),
        compiler_params=pltpu.CompilerParams(
            dimension_semantics=("parallel", "parallel"),
            vmem_limit_bytes=vmem_limit),
    )(x, ctx, wq_h, wk_h, wv_h, wo_h, bo)


def _pallas_kv_proj(ctx, wk_h, wv_h, *, bm, vmem_limit):
    B, nk_pad, dc = ctx.shape
    heads, _, dh = wk_h.shape
    return pl.pallas_call(
        functools.partial(_kv_proj_kernel, heads=heads),
        out_shape=(jax.ShapeDtypeStruct((B, heads, nk_pad, dh), ctx.dtype),
                   jax.ShapeDtypeStruct((B, heads, nk_pad, dh), ctx.dtype)),
        grid_spec=pltpu.PrefetchScalarGridSpec(
            num_scalar_prefetch=0,
            grid=(B, nk_pad // bm),
            in_specs=[
                pl.BlockSpec((1, bm, dc), lambda b, i: (b, i, 0)),
                pl.BlockSpec((heads, dc, dh), lambda b, i: (0, 0, 0)),
                pl.BlockSpec((heads, dc, dh), lambda b, i: (0, 0, 0)),
            ],
            out_specs=(
                pl.BlockSpec((1, heads, bm, dh), lambda b, i: (b, 0, i, 0)),
                pl.BlockSpec((1, heads, bm, dh), lambda b, i: (b, 0, i, 0)),
            ),
        ),
        compiler_params=pltpu.CompilerParams(
            dimension_semantics=("parallel", "parallel"),
            vmem_limit_bytes=vmem_limit),
    )(ctx, wk_h, wv_h)


def _pallas_attn_flash(x, k, v, wq_h, wo_h, bo, *,
                       heads, nk_valid, bq, bk, vmem_limit):
    B, nq_pad, dq = x.shape
    _, _, nk_pad, dh = k.shape
    kernel = functools.partial(_attn_flash_kernel, heads=heads,
                               nk_valid=nk_valid, bk=bk)
    return pl.pallas_call(
        kernel,
        out_shape=jax.ShapeDtypeStruct((B, nq_pad, dq), x.dtype),
        grid_spec=pltpu.PrefetchScalarGridSpec(
            num_scalar_prefetch=0,
            grid=(B, nq_pad // bq, nk_pad // bk),
            in_specs=[
                pl.BlockSpec((1, bq, dq), lambda b, qi, ki: (b, qi, 0)),
                pl.BlockSpec((1, heads, bk, dh), lambda b, qi, ki: (b, 0, ki, 0)),
                pl.BlockSpec((1, heads, bk, dh), lambda b, qi, ki: (b, 0, ki, 0)),
                pl.BlockSpec((heads, dq, dh), lambda b, qi, ki: (0, 0, 0)),
                pl.BlockSpec((heads, dh, dq), lambda b, qi, ki: (0, 0, 0)),
                pl.BlockSpec((1, dq), lambda b, qi, ki: (0, 0)),
            ],
            out_specs=pl.BlockSpec((1, bq, dq), lambda b, qi, ki: (b, qi, 0)),
            scratch_shapes=[
                pltpu.VMEM((heads, bq, dh), x.dtype),      # projected Q (scale folded)
                pltpu.VMEM((heads, bq, dh), jnp.float32),  # unnormalized PV acc
                pltpu.VMEM((heads, bq, 1), jnp.float32),   # running row max
                pltpu.VMEM((heads, bq, 1), jnp.float32),   # running denom
            ],
        ),
        compiler_params=pltpu.CompilerParams(
            dimension_semantics=("parallel", "parallel", "arbitrary"),
            vmem_limit_bytes=vmem_limit),
    )(x, k, v, wq_h, wo_h, bo)


# ---------------------------------------------------------------------------
# Public forward
# ---------------------------------------------------------------------------
def cross_attention_forward(x, context, params, heads, dim_head, *,
                            force_flash=False):
    """Pallas implementation of CrossAttention.forward (eval mode).

    x:       (B, Nq, query_dim)
    context: (B, Nk, context_dim) or None (self-attention)
    params:  weights stored as (Din, Dout) == W^T of the torch nn.Linear,
             bias as (1, query_dim).
    """
    if context is None:
        context = x

    B, Nq, Dq = x.shape
    _, Nk, Dc = context.shape
    dh = dim_head
    scale = dim_head ** (-0.5)
    dtype = x.dtype
    itemsize = jnp.dtype(dtype).itemsize

    # Fold the softmax scale into Wq (applied once, to the weight) and lay all
    # weights out head-leading so per-head access in kernels is leading-axis
    # indexing rather than lane slices.
    wq_s = (params["wq"].astype(jnp.float32) * scale).astype(params["wq"].dtype)
    wq_h = wq_s.reshape(Dq, heads, dh).transpose(1, 0, 2)          # (H, Dq, dh)
    wk_h = params["wk"].reshape(Dc, heads, dh).transpose(1, 0, 2)  # (H, Dc, dh)
    wv_h = params["wv"].reshape(Dc, heads, dh).transpose(1, 0, 2)  # (H, Dc, dh)
    wo_h = params["wo"].reshape(heads, dh, Dq)                     # rows head-major
    bo = params["bo"]

    budget = _vmem_budget_bytes()

    # q-row tiling: 16-aligned, padded tail, >= 2 parallel steps for v7x TCs.
    small_ctx = (not force_flash) and _round_up(Nk, 16) <= 256
    bq_cap = 128 if small_ctx else 256
    bq = min(_round_up(Nq, 16), bq_cap)
    while B * (-(-Nq // bq)) < 2 and bq > 16:
        bq = max(16, _round_up(bq // 2, 16))
    nq_pad = _round_up(Nq, bq)
    x_p = jnp.pad(x, ((0, 0), (0, nq_pad - Nq), (0, 0))) if nq_pad != Nq else x

    if small_ctx:
        # Short context (e.g. CLIP's 77 tokens): single fully fused kernel;
        # K/V are projected straight in VMEM, never written to HBM.
        nk_pad = _round_up(Nk, 16)
        c_p = (jnp.pad(context, ((0, 0), (0, nk_pad - Nk), (0, 0)))
               if nk_pad != Nk else context)
        out = _pallas_attn_small(x_p, c_p, wq_h, wk_h, wv_h, wo_h, bo,
                                 heads=heads, nk_valid=Nk, bq=bq,
                                 vmem_limit=budget)
    else:
        # General / long-context path: head-leading fused K+V projection,
        # then flash attention with fused Q projection + output projection.
        bk = _pick_bk(Nk, heads, dh, Dq, bq, itemsize, budget)
        nk_pad = _round_up(Nk, bk)
        c_p = (jnp.pad(context, ((0, 0), (0, nk_pad - Nk), (0, 0)))
               if nk_pad != Nk else context)
        k, v = _pallas_kv_proj(c_p, wk_h, wv_h, bm=bk, vmem_limit=budget)
        out = _pallas_attn_flash(x_p, k, v, wq_h, wo_h, bo,
                                 heads=heads, nk_valid=Nk, bq=bq, bk=bk,
                                 vmem_limit=budget)

    # Dropout(p=0.0) in to_out is identity in eval mode.
    return out[:, :Nq, :] if nq_pad != Nq else out


# ---------------------------------------------------------------------------
# Reference (plain JAX) for sanity check
# ---------------------------------------------------------------------------
def cross_attention_ref(x, context, params, heads, dim_head):
    if context is None:
        context = x
    B, Nq, Dq = x.shape
    _, Nk, _ = context.shape
    scale = dim_head ** (-0.5)

    q = x @ params["wq"]
    k = context @ params["wk"]
    v = context @ params["wv"]

    def split(t, N):
        return t.reshape(B, N, heads, dim_head).transpose(0, 2, 1, 3)

    qh, kh, vh = split(q, Nq), split(k, Nk), split(v, Nk)
    sim = jnp.einsum("bhid,bhjd->bhij",
                     qh.astype(jnp.float32), kh.astype(jnp.float32)) * scale
    p = jax.nn.softmax(sim, axis=-1)
    o = jnp.einsum("bhij,bhjd->bhid", p, vh.astype(jnp.float32))
    o = o.transpose(0, 2, 1, 3).reshape(B, Nq, heads * dim_head)
    return (o @ params["wo"] + params["bo"][0]).astype(x.dtype)


# ---------------------------------------------------------------------------
# Main
# ---------------------------------------------------------------------------
if __name__ == "__main__":
    B = 2           # batch
    Nq = 16         # query tokens
    Nk = 8          # context tokens
    query_dim = 32
    context_dim = 32
    heads = 4
    dim_head = 16
    inner = heads * dim_head  # 64

    key = jax.random.PRNGKey(0)
    kx, kc, kq, kk, kv, ko, kb = jax.random.split(key, 7)

    x = jax.random.normal(kx, (B, Nq, query_dim), dtype=jnp.float32)
    context = jax.random.normal(kc, (B, Nk, context_dim), dtype=jnp.float32)

    def lin_init(k, din, dout):
        bound = 1.0 / math.sqrt(din)
        return jax.random.uniform(k, (din, dout), jnp.float32, -bound, bound)

    params = {
        "wq": lin_init(kq, query_dim, inner),
        "wk": lin_init(kk, context_dim, inner),
        "wv": lin_init(kv, context_dim, inner),
        "wo": lin_init(ko, inner, query_dim),
        "bo": jax.random.uniform(
            kb, (1, query_dim), jnp.float32,
            -1.0 / math.sqrt(inner), 1.0 / math.sqrt(inner)),
    }

    # 1) Cross-attention -> short-context fully fused path.
    out_cross = jax.block_until_ready(
        cross_attention_forward(x, context, params, heads, dim_head))
    ref_cross = cross_attention_ref(x, context, params, heads, dim_head)
    assert out_cross.shape == (B, Nq, query_dim), out_cross.shape
    assert jnp.allclose(out_cross, ref_cross, atol=2e-3, rtol=2e-3), (
        float(jnp.max(jnp.abs(out_cross - ref_cross))))

    # 2) Self-attention (context=None), same fused path.
    out_self = jax.block_until_ready(
        cross_attention_forward(x, None, params, heads, dim_head))
    ref_self = cross_attention_ref(x, None, params, heads, dim_head)
    assert jnp.allclose(out_self, ref_self, atol=2e-3, rtol=2e-3), (
        float(jnp.max(jnp.abs(out_self - ref_self))))

    # 3) Force the general flash path (fused Q projection, head-leading K/V
    #    projection kernel, online softmax with KV tail masking).
    out_flash = jax.block_until_ready(
        cross_attention_forward(x, context, params, heads, dim_head,
                                force_flash=True))
    assert jnp.allclose(out_flash, ref_cross, atol=2e-3, rtol=2e-3), (
        float(jnp.max(jnp.abs(out_flash - ref_cross))))

    print("KERNEL_OK")
</pallas_src>

<mosaic_0001>
module attributes {stable_mosaic.version = 11 : i64} {
  func.func @_attn_small_kernel(%arg0: i32, %arg1: i32, %arg2: memref<1x16x32xf32, #tpu.memory_space<vmem>>, %arg3: memref<1x16x32xf32, #tpu.memory_space<vmem>>, %arg4: memref<4x32x16xf32, #tpu.memory_space<vmem>>, %arg5: memref<4x32x16xf32, #tpu.memory_space<vmem>>, %arg6: memref<4x32x16xf32, #tpu.memory_space<vmem>>, %arg7: memref<4x16x32xf32, #tpu.memory_space<vmem>>, %arg8: memref<1x32xf32, #tpu.memory_space<vmem>>, %arg9: memref<1x16x32xf32, #tpu.memory_space<vmem>>) attributes {dimension_semantics = [#tpu.dimension_semantics<parallel>, #tpu.dimension_semantics<parallel>], iteration_bounds = array<i64: 2, 1>, scalar_prefetch = 0 : i64, scratch_operands = 0 : i64, tpu.core_type = #tpu.core_type<tc>, window_params = [{transform_indices = @transform_0, window_bounds = array<i64: 1, 16, 32>}, {transform_indices = @transform_1, window_bounds = array<i64: 1, 16, 32>}, {pipeline_mode = #tpu.pipeline_mode<synchronous>, transform_indices = @transform_2, window_bounds = array<i64: 4, 32, 16>}, {pipeline_mode = #tpu.pipeline_mode<synchronous>, transform_indices = @transform_3, window_bounds = array<i64: 4, 32, 16>}, {pipeline_mode = #tpu.pipeline_mode<synchronous>, transform_indices = @transform_4, window_bounds = array<i64: 4, 32, 16>}, {pipeline_mode = #tpu.pipeline_mode<synchronous>, transform_indices = @transform_5, window_bounds = array<i64: 4, 16, 32>}, {pipeline_mode = #tpu.pipeline_mode<synchronous>, transform_indices = @transform_6, window_bounds = array<i64: 1, 32>}, {transform_indices = @transform_7, window_bounds = array<i64: 1, 16, 32>}]} {
    %c0 = arith.constant 0 : index
    %c0_0 = arith.constant 0 : index
    %c0_1 = arith.constant 0 : index
    %0 = vector.load %arg2[%c0, %c0_0, %c0_1] : memref<1x16x32xf32, #tpu.memory_space<vmem>>, vector<1x16x32xf32>
    %1 = vector.shape_cast %0 : vector<1x16x32xf32> to vector<16x32xf32>
    %c0_2 = arith.constant 0 : index
    %c0_3 = arith.constant 0 : index
    %c0_4 = arith.constant 0 : index
    %2 = vector.load %arg3[%c0_2, %c0_3, %c0_4] : memref<1x16x32xf32, #tpu.memory_space<vmem>>, vector<1x16x32xf32>
    %3 = vector.shape_cast %2 : vector<1x16x32xf32> to vector<16x32xf32>
    %4 = tpu.iota {dimensions = array<i32: 1>} : vector<1x16xi32>
    %c8_i32 = arith.constant 8 : i32
    %5 = vector.broadcast %c8_i32 : i32 to vector<1x16xi32>
    %6 = arith.cmpi slt, %4, %5 : vector<1x16xi32>
    %cst = arith.constant 0.000000e+00 : f32
    %7 = vector.broadcast %cst : f32 to vector<16x32xf32>
    %c0_5 = arith.constant 0 : index
    %c0_6 = arith.constant 0 : index
    %c0_7 = arith.constant 0 : index
    %8 = vector.load %arg4[%c0_5, %c0_6, %c0_7] : memref<4x32x16xf32, #tpu.memory_space<vmem>>, vector<1x32x16xf32>
    %9 = vector.shape_cast %8 : vector<1x32x16xf32> to vector<32x16xf32>
    %cst_8 = arith.constant dense<0.000000e+00> : vector<16x16xf32>
    %10 = tpu.matmul %1, %9, %cst_8 {dimension_numbers = #tpu.dot_dimension_numbers<[1], [0], [0], [1], [0, 0, 1, 1], [], []>} : vector<16x32xf32>, vector<32x16xf32>, vector<16x16xf32> -> vector<16x16xf32>
    %c0_9 = arith.constant 0 : index
    %c0_10 = arith.constant 0 : index
    %c0_11 = arith.constant 0 : index
    %11 = vector.load %arg5[%c0_9, %c0_10, %c0_11] : memref<4x32x16xf32, #tpu.memory_space<vmem>>, vector<1x32x16xf32>
    %12 = vector.shape_cast %11 : vector<1x32x16xf32> to vector<32x16xf32>
    %cst_12 = arith.constant dense<0.000000e+00> : vector<16x16xf32>
    %13 = tpu.matmul %3, %12, %cst_12 {dimension_numbers = #tpu.dot_dimension_numbers<[1], [0], [0], [1], [0, 0, 1, 1], [], []>} : vector<16x32xf32>, vector<32x16xf32>, vector<16x16xf32> -> vector<16x16xf32>
    %c0_13 = arith.constant 0 : index
    %c0_14 = arith.constant 0 : index
    %c0_15 = arith.constant 0 : index
    %14 = vector.load %arg6[%c0_13, %c0_14, %c0_15] : memref<4x32x16xf32, #tpu.memory_space<vmem>>, vector<1x32x16xf32>
    %15 = vector.shape_cast %14 : vector<1x32x16xf32> to vector<32x16xf32>
    %cst_16 = arith.constant dense<0.000000e+00> : vector<16x16xf32>
    %16 = tpu.matmul %3, %15, %cst_16 {dimension_numbers = #tpu.dot_dimension_numbers<[1], [0], [0], [1], [0, 0, 1, 1], [], []>} : vector<16x32xf32>, vector<32x16xf32>, vector<16x16xf32> -> vector<16x16xf32>
    %cst_17 = arith.constant dense<0.000000e+00> : vector<16x16xf32>
    %17 = tpu.matmul %10, %13, %cst_17 {dimension_numbers = #tpu.dot_dimension_numbers<[1], [1], [0], [0], [0, 0, 1, 0], [], []>} : vector<16x16xf32>, vector<16x16xf32>, vector<16x16xf32> -> vector<16x16xf32>
    %cst_18 = arith.constant 0xFF800000 : f32
    %18 = vector.shape_cast %6 : vector<1x16xi1> to vector<1x16xi1>
    %19 = vector.broadcast %18 : vector<1x16xi1> to vector<16x16xi1>
    %20 = vector.broadcast %cst_18 : f32 to vector<16x16xf32>
    %21 = arith.select %19, %17, %20 : vector<16x16xi1>, vector<16x16xf32>
    %cst_19 = arith.constant dense<0xFF800000> : vector<16xf32>
    %22 = vector.multi_reduction <maximumf>, %21, %cst_19 [1] : vector<16x16xf32> to vector<16xf32>
    %23 = vector.shape_cast %22 : vector<16xf32> to vector<16x1xf32>
    %24 = vector.broadcast %23 : vector<16x1xf32> to vector<16x16xf32>
    %25 = arith.subf %21, %24 : vector<16x16xf32>
    %26 = math.exp %25 : vector<16x16xf32>
    %cst_20 = arith.constant dense<0.000000e+00> : vector<16xf32>
    %27 = vector.multi_reduction <add>, %26, %cst_20 [1] : vector<16x16xf32> to vector<16xf32>
    %28 = vector.shape_cast %27 : vector<16xf32> to vector<16x1xf32>
    %cst_21 = arith.constant dense<0.000000e+00> : vector<16x16xf32>
    %29 = tpu.matmul %26, %16, %cst_21 {dimension_numbers = #tpu.dot_dimension_numbers<[1], [0], [0], [1], [0, 0, 1, 1], [], []>} : vector<16x16xf32>, vector<16x16xf32>, vector<16x16xf32> -> vector<16x16xf32>
    %30 = tpu.reciprocal %28 : vector<16x1xf32> -> vector<16x1xf32>
    %31 = vector.broadcast %30 : vector<16x1xf32> to vector<16x16xf32>
    %32 = arith.mulf %29, %31 : vector<16x16xf32>
    %c0_22 = arith.constant 0 : index
    %c0_23 = arith.constant 0 : index
    %c0_24 = arith.constant 0 : index
    %33 = vector.load %arg7[%c0_22, %c0_23, %c0_24] : memref<4x16x32xf32, #tpu.memory_space<vmem>>, vector<1x16x32xf32>
    %34 = vector.shape_cast %33 : vector<1x16x32xf32> to vector<16x32xf32>
    %cst_25 = arith.constant dense<0.000000e+00> : vector<16x32xf32>
    %35 = tpu.matmul %32, %34, %cst_25 {dimension_numbers = #tpu.dot_dimension_numbers<[1], [0], [0], [1], [0, 0, 1, 1], [], []>} : vector<16x16xf32>, vector<16x32xf32>, vector<16x32xf32> -> vector<16x32xf32>
    %36 = arith.addf %7, %35 : vector<16x32xf32>
    %c1 = arith.constant 1 : index
    %c0_26 = arith.constant 0 : index
    %c0_27 = arith.constant 0 : index
    %37 = vector.load %arg4[%c1, %c0_26, %c0_27] : memref<4x32x16xf32, #tpu.memory_space<vmem>>, vector<1x32x16xf32>
    %38 = vector.shape_cast %37 : vector<1x32x16xf32> to vector<32x16xf32>
    %cst_28 = arith.constant dense<0.000000e+00> : vector<16x16xf32>
    %39 = tpu.matmul %1, %38, %cst_28 {dimension_numbers = #tpu.dot_dimension_numbers<[1], [0], [0], [1], [0, 0, 1, 1], [], []>} : vector<16x32xf32>, vector<32x16xf32>, vector<16x16xf32> -> vector<16x16xf32>
    %c1_29 = arith.constant 1 : index
    %c0_30 = arith.constant 0 : index
    %c0_31 = arith.constant 0 : index
    %40 = vector.load %arg5[%c1_29, %c0_30, %c0_31] : memref<4x32x16xf32, #tpu.memory_space<vmem>>, vector<1x32x16xf32>
    %41 = vector.shape_cast %40 : vector<1x32x16xf32> to vector<32x16xf32>
    %cst_32 = arith.constant dense<0.000000e+00> : vector<16x16xf32>
    %42 = tpu.matmul %3, %41, %cst_32 {dimension_numbers = #tpu.dot_dimension_numbers<[1], [0], [0], [1], [0, 0, 1, 1], [], []>} : vector<16x32xf32>, vector<32x16xf32>, vector<16x16xf32> -> vector<16x16xf32>
    %c1_33 = arith.constant 1 : index
    %c0_34 = arith.constant 0 : index
    %c0_35 = arith.constant 0 : index
    %43 = vector.load %arg6[%c1_33, %c0_34, %c0_35] : memref<4x32x16xf32, #tpu.memory_space<vmem>>, vector<1x32x16xf32>
    %44 = vector.shape_cast %43 : vector<1x32x16xf32> to vector<32x16xf32>
    %cst_36 = arith.constant dense<0.000000e+00> : vector<16x16xf32>
    %45 = tpu.matmul %3, %44, %cst_36 {dimension_numbers = #tpu.dot_dimension_numbers<[1], [0], [0], [1], [0, 0, 1, 1], [], []>} : vector<16x32xf32>, vector<32x16xf32>, vector<16x16xf32> -> vector<16x16xf32>
    %cst_37 = arith.constant dense<0.000000e+00> : vector<16x16xf32>
    %46 = tpu.matmul %39, %42, %cst_37 {dimension_numbers = #tpu.dot_dimension_numbers<[1], [1], [0], [0], [0, 0, 1, 0], [], []>} : vector<16x16xf32>, vector<16x16xf32>, vector<16x16xf32> -> vector<16x16xf32>
    %cst_38 = arith.constant 0xFF800000 : f32
    %47 = vector.shape_cast %6 : vector<1x16xi1> to vector<1x16xi1>
    %48 = vector.broadcast %47 : vector<1x16xi1> to vector<16x16xi1>
    %49 = vector.broadcast %cst_38 : f32 to vector<16x16xf32>
    %50 = arith.select %48, %46, %49 : vector<16x16xi1>, vector<16x16xf32>
    %cst_39 = arith.constant dense<0xFF800000> : vector<16xf32>
    %51 = vector.multi_reduction <maximumf>, %50, %cst_39 [1] : vector<16x16xf32> to vector<16xf32>
    %52 = vector.shape_cast %51 : vector<16xf32> to vector<16x1xf32>
    %53 = vector.broadcast %52 : vector<16x1xf32> to vector<16x16xf32>
    %54 = arith.subf %50, %53 : vector<16x16xf32>
    %55 = math.exp %54 : vector<16x16xf32>
    %cst_40 = arith.constant dense<0.000000e+00> : vector<16xf32>
    %56 = vector.multi_reduction <add>, %55, %cst_40 [1] : vector<16x16xf32> to vector<16xf32>
    %57 = vector.shape_cast %56 : vector<16xf32> to vector<16x1xf32>
    %cst_41 = arith.constant dense<0.000000e+00> : vector<16x16xf32>
    %58 = tpu.matmul %55, %45, %cst_41 {dimension_numbers = #tpu.dot_dimension_numbers<[1], [0], [0], [1], [0, 0, 1, 1], [], []>} : vector<16x16xf32>, vector<16x16xf32>, vector<16x16xf32> -> vector<16x16xf32>
    %59 = tpu.reciprocal %57 : vector<16x1xf32> -> vector<16x1xf32>
    %60 = vector.broadcast %59 : vector<16x1xf32> to vector<16x16xf32>
    %61 = arith.mulf %58, %60 : vector<16x16xf32>
    %c1_42 = arith.constant 1 : index
    %c0_43 = arith.constant 0 : index
    %c0_44 = arith.constant 0 : index
    %62 = vector.load %arg7[%c1_42, %c0_43, %c0_44] : memref<4x16x32xf32, #tpu.memory_space<vmem>>, vector<1x16x32xf32>
    %63 = vector.shape_cast %62 : vector<1x16x32xf32> to vector<16x32xf32>
    %cst_45 = arith.constant dense<0.000000e+00> : vector<16x32xf32>
    %64 = tpu.matmul %61, %63, %cst_45 {dimension_numbers = #tpu.dot_dimension_numbers<[1], [0], [0], [1], [0, 0, 1, 1], [], []>} : vector<16x16xf32>, vector<16x32xf32>, vector<16x32xf32> -> vector<16x32xf32>
    %65 = arith.addf %36, %64 : vector<16x32xf32>
    %c2 = arith.constant 2 : index
    %c0_46 = arith.constant 0 : index
    %c0_47 = arith.constant 0 : index
    %66 = vector.load %arg4[%c2, %c0_46, %c0_47] : memref<4x32x16xf32, #tpu.memory_space<vmem>>, vector<1x32x16xf32>
    %67 = vector.shape_cast %66 : vector<1x32x16xf32> to vector<32x16xf32>
    %cst_48 = arith.constant dense<0.000000e+00> : vector<16x16xf32>
    %68 = tpu.matmul %1, %67, %cst_48 {dimension_numbers = #tpu.dot_dimension_numbers<[1], [0], [0], [1], [0, 0, 1, 1], [], []>} : vector<16x32xf32>, vector<32x16xf32>, vector<16x16xf32> -> vector<16x16xf32>
    %c2_49 = arith.constant 2 : index
    %c0_50 = arith.constant 0 : index
    %c0_51 = arith.constant 0 : index
    %69 = vector.load %arg5[%c2_49, %c0_50, %c0_51] : memref<4x32x16xf32, #tpu.memory_space<vmem>>, vector<1x32x16xf32>
    %70 = vector.shape_cast %69 : vector<1x32x16xf32> to vector<32x16xf32>
    %cst_52 = arith.constant dense<0.000000e+00> : vector<16x16xf32>
    %71 = tpu.matmul %3, %70, %cst_52 {dimension_numbers = #tpu.dot_dimension_numbers<[1], [0], [0], [1], [0, 0, 1, 1], [], []>} : vector<16x32xf32>, vector<32x16xf32>, vector<16x16xf32> -> vector<16x16xf32>
    %c2_53 = arith.constant 2 : index
    %c0_54 = arith.constant 0 : index
    %c0_55 = arith.constant 0 : index
    %72 = vector.load %arg6[%c2_53, %c0_54, %c0_55] : memref<4x32x16xf32, #tpu.memory_space<vmem>>, vector<1x32x16xf32>
    %73 = vector.shape_cast %72 : vector<1x32x16xf32> to vector<32x16xf32>
    %cst_56 = arith.constant dense<0.000000e+00> : vector<16x16xf32>
    %74 = tpu.matmul %3, %73, %cst_56 {dimension_numbers = #tpu.dot_dimension_numbers<[1], [0], [0], [1], [0, 0, 1, 1], [], []>} : vector<16x32xf32>, vector<32x16xf32>, vector<16x16xf32> -> vector<16x16xf32>
    %cst_57 = arith.constant dense<0.000000e+00> : vector<16x16xf32>
    %75 = tpu.matmul %68, %71, %cst_57 {dimension_numbers = #tpu.dot_dimension_numbers<[1], [1], [0], [0], [0, 0, 1, 0], [], []>} : vector<16x16xf32>, vector<16x16xf32>, vector<16x16xf32> -> vector<16x16xf32>
    %cst_58 = arith.constant 0xFF800000 : f32
    %76 = vector.shape_cast %6 : vector<1x16xi1> to vector<1x16xi1>
    %77 = vector.broadcast %76 : vector<1x16xi1> to vector<16x16xi1>
    %78 = vector.broadcast %cst_58 : f32 to vector<16x16xf32>
    %79 = arith.select %77, %75, %78 : vector<16x16xi1>, vector<16x16xf32>
    %cst_59 = arith.constant dense<0xFF800000> : vector<16xf32>
    %80 = vector.multi_reduction <maximumf>, %79, %cst_59 [1] : vector<16x16xf32> to vector<16xf32>
    %81 = vector.shape_cast %80 : vector<16xf32> to vector<16x1xf32>
    %82 = vector.broadcast %81 : vector<16x1xf32> to vector<16x16xf32>
    %83 = arith.subf %79, %82 : vector<16x16xf32>
    %84 = math.exp %83 : vector<16x16xf32>
    %cst_60 = arith.constant dense<0.000000e+00> : vector<16xf32>
    %85 = vector.multi_reduction <add>, %84, %cst_60 [1] : vector<16x16xf32> to vector<16xf32>
    %86 = vector.shape_cast %85 : vector<16xf32> to vector<16x1xf32>
    %cst_61 = arith.constant dense<0.000000e+00> : vector<16x16xf32>
    %87 = tpu.matmul %84, %74, %cst_61 {dimension_numbers = #tpu.dot_dimension_numbers<[1], [0], [0], [1], [0, 0, 1, 1], [], []>} : vector<16x16xf32>, vector<16x16xf32>, vector<16x16xf32> -> vector<16x16xf32>
    %88 = tpu.reciprocal %86 : vector<16x1xf32> -> vector<16x1xf32>
    %89 = vector.broadcast %88 : vector<16x1xf32> to vector<16x16xf32>
    %90 = arith.mulf %87, %89 : vector<16x16xf32>
    %c2_62 = arith.constant 2 : index
    %c0_63 = arith.constant 0 : index
    %c0_64 = arith.constant 0 : index
    %91 = vector.load %arg7[%c2_62, %c0_63, %c0_64] : memref<4x16x32xf32, #tpu.memory_space<vmem>>, vector<1x16x32xf32>
    %92 = vector.shape_cast %91 : vector<1x16x32xf32> to vector<16x32xf32>
    %cst_65 = arith.constant dense<0.000000e+00> : vector<16x32xf32>
    %93 = tpu.matmul %90, %92, %cst_65 {dimension_numbers = #tpu.dot_dimension_numbers<[1], [0], [0], [1], [0, 0, 1, 1], [], []>} : vector<16x16xf32>, vector<16x32xf32>, vector<16x32xf32> -> vector<16x32xf32>
    %94 = arith.addf %65, %93 : vector<16x32xf32>
    %c3 = arith.constant 3 : index
    %c0_66 = arith.constant 0 : index
    %c0_67 = arith.constant 0 : index
    %95 = vector.load %arg4[%c3, %c0_66, %c0_67] : memref<4x32x16xf32, #tpu.memory_space<vmem>>, vector<1x32x16xf32>
    %96 = vector.shape_cast %95 : vector<1x32x16xf32> to vector<32x16xf32>
    %cst_68 = arith.constant dense<0.000000e+00> : vector<16x16xf32>
    %97 = tpu.matmul %1, %96, %cst_68 {dimension_numbers = #tpu.dot_dimension_numbers<[1], [0], [0], [1], [0, 0, 1, 1], [], []>} : vector<16x32xf32>, vector<32x16xf32>, vector<16x16xf32> -> vector<16x16xf32>
    %c3_69 = arith.constant 3 : index
    %c0_70 = arith.constant 0 : index
    %c0_71 = arith.constant 0 : index
    %98 = vector.load %arg5[%c3_69, %c0_70, %c0_71] : memref<4x32x16xf32, #tpu.memory_space<vmem>>, vector<1x32x16xf32>
    %99 = vector.shape_cast %98 : vector<1x32x16xf32> to vector<32x16xf32>
    %cst_72 = arith.constant dense<0.000000e+00> : vector<16x16xf32>
    %100 = tpu.matmul %3, %99, %cst_72 {dimension_numbers = #tpu.dot_dimension_numbers<[1], [0], [0], [1], [0, 0, 1, 1], [], []>} : vector<16x32xf32>, vector<32x16xf32>, vector<16x16xf32> -> vector<16x16xf32>
    %c3_73 = arith.constant 3 : index
    %c0_74 = arith.constant 0 : index
    %c0_75 = arith.constant 0 : index
    %101 = vector.load %arg6[%c3_73, %c0_74, %c0_75] : memref<4x32x16xf32, #tpu.memory_space<vmem>>, vector<1x32x16xf32>
    %102 = vector.shape_cast %101 : vector<1x32x16xf32> to vector<32x16xf32>
    %cst_76 = arith.constant dense<0.000000e+00> : vector<16x16xf32>
    %103 = tpu.matmul %3, %102, %cst_76 {dimension_numbers = #tpu.dot_dimension_numbers<[1], [0], [0], [1], [0, 0, 1, 1], [], []>} : vector<16x32xf32>, vector<32x16xf32>, vector<16x16xf32> -> vector<16x16xf32>
    %cst_77 = arith.constant dense<0.000000e+00> : vector<16x16xf32>
    %104 = tpu.matmul %97, %100, %cst_77 {dimension_numbers = #tpu.dot_dimension_numbers<[1], [1], [0], [0], [0, 0, 1, 0], [], []>} : vector<16x16xf32>, vector<16x16xf32>, vector<16x16xf32> -> vector<16x16xf32>
    %cst_78 = arith.constant 0xFF800000 : f32
    %105 = vector.shape_cast %6 : vector<1x16xi1> to vector<1x16xi1>
    %106 = vector.broadcast %105 : vector<1x16xi1> to vector<16x16xi1>
    %107 = vector.broadcast %cst_78 : f32 to vector<16x16xf32>
    %108 = arith.select %106, %104, %107 : vector<16x16xi1>, vector<16x16xf32>
    %cst_79 = arith.constant dense<0xFF800000> : vector<16xf32>
    %109 = vector.multi_reduction <maximumf>, %108, %cst_79 [1] : vector<16x16xf32> to vector<16xf32>
    %110 = vector.shape_cast %109 : vector<16xf32> to vector<16x1xf32>
    %111 = vector.broadcast %110 : vector<16x1xf32> to vector<16x16xf32>
    %112 = arith.subf %108, %111 : vector<16x16xf32>
    %113 = math.exp %112 : vector<16x16xf32>
    %cst_80 = arith.constant dense<0.000000e+00> : vector<16xf32>
    %114 = vector.multi_reduction <add>, %113, %cst_80 [1] : vector<16x16xf32> to vector<16xf32>
    %115 = vector.shape_cast %114 : vector<16xf32> to vector<16x1xf32>
    %cst_81 = arith.constant dense<0.000000e+00> : vector<16x16xf32>
    %116 = tpu.matmul %113, %103, %cst_81 {dimension_numbers = #tpu.dot_dimension_numbers<[1], [0], [0], [1], [0, 0, 1, 1], [], []>} : vector<16x16xf32>, vector<16x16xf32>, vector<16x16xf32> -> vector<16x16xf32>
    %117 = tpu.reciprocal %115 : vector<16x1xf32> -> vector<16x1xf32>
    %118 = vector.broadcast %117 : vector<16x1xf32> to vector<16x16xf32>
    %119 = arith.mulf %116, %118 : vector<16x16xf32>
    %c3_82 = arith.constant 3 : index
    %c0_83 = arith.constant 0 : index
    %c0_84 = arith.constant 0 : index
    %120 = vector.load %arg7[%c3_82, %c0_83, %c0_84] : memref<4x16x32xf32, #tpu.memory_space<vmem>>, vector<1x16x32xf32>
    %121 = vector.shape_cast %120 : vector<1x16x32xf32> to vector<16x32xf32>
    %cst_85 = arith.constant dense<0.000000e+00> : vector<16x32xf32>
    %122 = tpu.matmul %119, %121, %cst_85 {dimension_numbers = #tpu.dot_dimension_numbers<[1], [0], [0], [1], [0, 0, 1, 1], [], []>} : vector<16x16xf32>, vector<16x32xf32>, vector<16x32xf32> -> vector<16x32xf32>
    %123 = arith.addf %94, %122 : vector<16x32xf32>
    %c0_86 = arith.constant 0 : index
    %c0_87 = arith.constant 0 : index
    %124 = vector.load %arg8[%c0_86, %c0_87] : memref<1x32xf32, #tpu.memory_space<vmem>>, vector<1x32xf32>
    %125 = vector.broadcast %124 : vector<1x32xf32> to vector<16x32xf32>
    %126 = arith.addf %123, %125 : vector<16x32xf32>
    %c0_88 = arith.constant 0 : index
    %c0_89 = arith.constant 0 : index
    %c0_90 = arith.constant 0 : index
    %127 = vector.load %arg9[%c0_88, %c0_89, %c0_90] : memref<1x16x32xf32, #tpu.memory_space<vmem>>, vector<1x16x32xf32>
    %128 = vector.shape_cast %127 : vector<1x16x32xf32> to vector<16x32xf32>
    %129 = vector.shape_cast %126 : vector<16x32xf32> to vector<1x16x32xf32>
    tpu.vector_store %arg9[%c0_88, %c0_89, %c0_90], %129 {strides = array<i32>} : memref<1x16x32xf32, #tpu.memory_space<vmem>>, vector<1x16x32xf32>,
    return
  }
  func.func @transform_0(%arg0: i32, %arg1: i32) -> (i32, i32, i32) {
    %c0_i32 = arith.constant 0 : i32
    %c0_i32_0 = arith.constant 0 : i32
    return %arg0, %arg1, %c0_i32 : i32, i32, i32
  }
  func.func @transform_1(%arg0: i32, %arg1: i32) -> (i32, i32, i32) {
    %c0_i32 = arith.constant 0 : i32
    %c0_i32_0 = arith.constant 0 : i32
    %c0_i32_1 = arith.constant 0 : i32
    return %arg0, %c0_i32, %c0_i32_0 : i32, i32, i32
  }
  func.func @transform_2(%arg0: i32, %arg1: i32) -> (i32, i32, i32) {
    %c0_i32 = arith.constant 0 : i32
    %c0_i32_0 = arith.constant 0 : i32
    %c0_i32_1 = arith.constant 0 : i32
    %c0_i32_2 = arith.constant 0 : i32
    return %c0_i32, %c0_i32_0, %c0_i32_1 : i32, i32, i32
  }
  func.func @transform_3(%arg0: i32, %arg1: i32) -> (i32, i32, i32) {
    %c0_i32 = arith.constant 0 : i32
    %c0_i32_0 = arith.constant 0 : i32
    %c0_i32_1 = arith.constant 0 : i32
    %c0_i32_2 = arith.constant 0 : i32
    return %c0_i32, %c0_i32_0, %c0_i32_1 : i32, i32, i32
  }
  func.func @transform_4(%arg0: i32, %arg1: i32) -> (i32, i32, i32) {
    %c0_i32 = arith.constant 0 : i32
    %c0_i32_0 = arith.constant 0 : i32
    %c0_i32_1 = arith.constant 0 : i32
    %c0_i32_2 = arith.constant 0 : i32
    return %c0_i32, %c0_i32_0, %c0_i32_1 : i32, i32, i32
  }
  func.func @transform_5(%arg0: i32, %arg1: i32) -> (i32, i32, i32) {
    %c0_i32 = arith.constant 0 : i32
    %c0_i32_0 = arith.constant 0 : i32
    %c0_i32_1 = arith.constant 0 : i32
    %c0_i32_2 = arith.constant 0 : i32
    return %c0_i32, %c0_i32_0, %c0_i32_1 : i32, i32, i32
  }
  func.func @transform_6(%arg0: i32, %arg1: i32) -> (i32, i32) {
    %c0_i32 = arith.constant 0 : i32
    %c0_i32_0 = arith.constant 0 : i32
    %c0_i32_1 = arith.constant 0 : i32
    return %c0_i32, %c0_i32_0 : i32, i32
  }
  func.func @transform_7(%arg0: i32, %arg1: i32) -> (i32, i32, i32) {
    %c0_i32 = arith.constant 0 : i32
    %c0_i32_0 = arith.constant 0 : i32
    return %arg0, %arg1, %c0_i32 : i32, i32, i32
  }
}

</mosaic_0001>

<bundles_post_ra>
// kernel: tpu_custom_call.1
= control target key start
LH: loop header
LB: loop body
LE: loop exit
PB: predicated region body
PF: predicated region fallthrough
CT: control target
= control target key end

     0   :  { %12 = vsyncpa [#allocation3], 0  ;;  %s3790_s0 = inlined_call_operand.vmem [shape: f32[2,16,32], index: 0, kind: input, shape index: {}]   ;;  %s3791_s1 = inlined_call_operand.vmem [shape: f32[2,16,32], index: 1, kind: input, shape index: {}]   ;;  %s3792_s2 = inlined_call_operand.vmem [shape: f32[4,32,16], index: 2, kind: input, shape index: {}]   ;;  %s3793_s3 = inlined_call_operand.vmem [shape: f32[4,32,16], index: 3, kind: input, shape index: {}]   ;;  %s3794_s4 = inlined_call_operand.vmem [shape: f32[4,32,16], index: 4, kind: input, shape index: {}]   ;;  %s3795_s5 = inlined_call_operand.vmem [shape: f32[4,16,32], index: 5, kind: input, shape index: {}]   ;;  %s3796_s6 = inlined_call_operand.vmem [shape: f32[1,32], index: 6, kind: input, shape index: {}]   ;;  %s3797_s7 = inlined_call_operand.hbm [shape: f32[2,16,32], index: 7, kind: output, shape index: {}]  }
   0x1   :  { %14 = vsyncpa [#allocation3 + $0x1], 0  ;;  %s3356_s24 = smov 0   ;;  %s3358_s25 = smov 0  }
   0x2   :  { %s3360_s26 = smov 0   ;;  %s3362_s27 = smov 0  }
   0x3   :  { %s3364_s28 = smov 0   ;;  %s3366_s29 = smov 0  }
   0x4 LB: > { %s2533_s30 = sadd.s32 4294967295, %s3311_s29   ;;  %s2534_s8 = sadd.s32 4294967294, %s3311_s29   ;;  %s3311_s29 = sphi %s3366_s29, %s20_s29   ;;  %s3307_s28 = sphi %s3364_s28, %s3806_s28   ;;  %s3303_s27 = sphi %s3362_s27, %s3805_s27   ;;  %s3299_s26 = sphi %s3360_s26, %s3804_s26   ;;  %s3295_s25 = sphi %s3358_s25, %s3803_s25   ;;  %s3291_s24 = sphi %s3356_s24, %s3802_s24  }
   0x5   : > { %s32_s9 = sadd.s32 1, %s3307_s28  ;;  %s200_s10 = sadd.s32 1, %s3299_s26 }
   0x6   : > { %p34_p0 = scmp.ge.s32.totalorder %s32_s9, 2  ;;  %p210_p1 = scmp.ne.s32.totalorder %s3299_s26, %s3295_s25 }
   0x7   : > { %p211_p2 = scmp.eq.s32.totalorder %s2533_s30, 1  ;;  %p216_p3 = scmp.ne.s32.totalorder %s3295_s25, %s3291_s24 }
   0x8   : > { %s3808_s9 = smov (%p34_p0, %s32_s9), 0  ;;  %p217_p5 = scmp.eq.s32.totalorder %s2534_s8, 1 }
   0x9   : > { %p3396_p4 = por %p211_p2, %p210_p1  ;;  %s195_s12 = ssub.s32 %s3307_s28, %s3808_s9 }
   0xa   : > { %p2537_p6 = scmp.ge.s32.totalorder %s3311_s29, 1  ;;  %p198_p7 = scmp.eq.s32.totalorder %s195_s12, 0 }
   0xb   : > { %p3403_p8 = por %p217_p5, %p216_p3  ;;  %p271_p9 = scmp.lt.s32.totalorder %s3311_s29, 3 }
   0xc   : > { %s3409_s14 = scalar_select %p198_p7, %s3299_s26, %s200_s10  }
   0xd   : > { %p272_p10 = pnand %p2537_p6, %p271_p9 }
   0xe   : > { %v421_v0 = vld [vmem:[%s3793_s3] sm:$0xff] (!%p272_p10)  ;;  %v422_v1 = vld [vmem:[%s3793_s3 + $0x8] sm:$0xff] (!%p272_p10)  ;;  %v423_v2 = vld [vmem:[%s3793_s3 + $0x10] sm:$0xff] (!%p272_p10)  ;;  %p313_p11 = scmp.lt.s32.totalorder (!%p272_p10), %s3303_s27, 1  ;;  %vm339_vm0 = vcmask (!%p272_p10), 261120   ;;  %vm585_vm1 = vcmask (!%p272_p10), 130048   ;;  %v332_v28 = vlaneseq (!%p272_p10) }
   0xf   : > { %275 = sbr.rel (%p272_p10) target bundleno = 3319 (0xcf7), region = 48  ;;  %v2994_v3 = vpack.c.bf16 (!%p272_p10), %v422_v1, %v421_v0  ;;  %v424_v4 = vld [vmem:[%s3793_s3 + $0x18] sm:$0xff] (!%p272_p10)  ;;  %v335_v5 = vld [vmem:[%s3792_s2] sm:$0xff] (!%p272_p10)  ;;  %v336_v6 = vld [vmem:[%s3792_s2 + $0x8] sm:$0xff] (!%p272_p10)  ;;  %s309_s18 = sand.u32 (!%p272_p10), 1, %s3295_s25  }
  0x10   : > { %v2998_v7 = vpack.c.bf16 (!%p272_p10), %v424_v4, %v423_v2  ;;  %v2986_v8 = vpack.c.bf16 (!%p272_p10), %v336_v6, %v335_v5  ;;  %v337_v9 = vld [vmem:[%s3792_s2 + $0x10] sm:$0xff] (!%p272_p10)  ;;  %v338_v10 = vld [vmem:[%s3792_s2 + $0x18] sm:$0xff] (!%p272_p10)  ;;  %v506_v16 = vld [vmem:[%s3794_s4] sm:$0xff] (!%p272_p10)  ;;  %v3489_v29 = vand.u32 (!%p272_p10), 127, %v332_v28  ;;  %s2649_s30 = sshll.u32 (!%p272_p10), %s3303_s27, 8  ;;  %s3744_s15 = scalar_lea.sflag (!%p272_p10), [#allocation3], %s309_s18 }
  0x11   : > { %2995 = vmatprep.subr.bf16.mxu1 (!%p272_p10), %v2994_v3  ;;  %v2990_v11 = vpack.c.bf16 (!%p272_p10), %v338_v10, %v337_v9  ;;  %v507_v17 = vld [vmem:[%s3794_s4 + $0x8] sm:$0xff] (!%p272_p10)  ;;  %v508_v18 = vld [vmem:[%s3794_s4 + $0x10] sm:$0xff] (!%p272_p10)  ;;  %v509_v20 = vld [vmem:[%s3794_s4 + $0x18] sm:$0xff] (!%p272_p10)  ;;  %s3313_s16 = smov (!%p272_p10), [#allocation2]  }
  0x12   : > { %2997 = vmatpush3.bf16.msra.mxu1 (!%p272_p10), %v2994_v3  ;;  %2987 = vmatprep.subr.bf16.mxu0 (!%p272_p10), %v2986_v8  ;;  %v3002_v19 = vpack.c.bf16 (!%p272_p10), %v507_v17, %v506_v16  ;;  %v3006_v21 = vpack.c.bf16 (!%p272_p10), %v509_v20, %v508_v18  ;;  %vm3479_vm2 = vmpackc.low (!%p272_p10), %vm585_vm1, %vm585_vm1  ;;  %vm334_vm3 = vcmp.lt.s32.totalorder (!%p272_p10), %v3489_v29, 8  ;;  %v2561_v36 = vld [vmem:[%s3793_s3 + $0x20] sm:$0xff] (!%p272_p10)  ;;  %v2562_v37 = vld [vmem:[%s3793_s3 + $0x28] sm:$0xff] (!%p272_p10)  ;;  %s3237_s17 = sshll.u32 (!%p272_p10), %s3313_s16, 4  ;;  %s3238_s17 = int_to_ptr.vmem [resolvable:$false] %s3237_s17 }
  0x13   : > { %2999 = vmatprep.subr.bf16.mxu1 (!%p272_p10), %v2998_v7  ;;  %2989 = vmatpush3.bf16.msra.mxu0 (!%p272_p10), %v2986_v8  ;;  %v3028_v38 = vpack.c.bf16 (!%p272_p10), %v2562_v37, %v2561_v36  ;;  %v2563_v40 = vld [vmem:[%s3793_s3 + $0x30] sm:$0xff] (!%p272_p10)  ;;  %v2564_v41 = vld [vmem:[%s3793_s3 + $0x38] sm:$0xff] (!%p272_p10)  ;;  %v2555_v45 = vld [vmem:[%s3792_s2 + $0x20] sm:$0xff] (!%p272_p10) }
  0x14   : > { %2991 = vmatprep.subr.bf16.mxu0 (!%p272_p10), %v2990_v11  ;;  %v3032_v43 = vpack.c.bf16 (!%p272_p10), %v2564_v41, %v2563_v40  ;;  %v2556_v46 = vld [vmem:[%s3792_s2 + $0x28] sm:$0xff] (!%p272_p10)  ;;  %v2557_v55 = vld [vmem:[%s3792_s2 + $0x30] sm:$0xff] (!%p272_p10)  ;;  %v2558_v56 = vld [vmem:[%s3792_s2 + $0x38] sm:$0xff] (!%p272_p10) }
  0x15   : > { %v3020_v47 = vpack.c.bf16 (!%p272_p10), %v2556_v46, %v2555_v45  ;;  %v3024_v57 = vpack.c.bf16 (!%p272_p10), %v2558_v56, %v2557_v55  ;;  %v2567_v62 = vld [vmem:[%s3794_s4 + $0x20] sm:$0xff] (!%p272_p10)  ;;  %v2568_v63 = vld [vmem:[%s3794_s4 + $0x28] sm:$0xff] (!%p272_p10)  ;;  %v2569_v0 = vld [vmem:[%s3794_s4 + $0x30] sm:$0xff] (!%p272_p10) }
  0x16   : > { %s314_s12 = scalar_select %p313_p11, %s3303_s27, 1  ;;  %3001 = vmatpush3.bf16.msra.mxu1 %v2998_v7  ;;  %v3036_v1 = vpack.c.bf16 %v2568_v63, %v2567_v62  ;;  %v2570_v2 = vld [vmem:[%s3794_s4 + $0x38] sm:$0xff]  ;;  %v2585_v41 = vld [vmem:[%s3792_s2 + $0x40] sm:$0xff]  ;;  %v2593_v63 = vld [vmem:[%s3793_s3 + $0x50] sm:$0xff] }
  0x17   : > { %2993 = vmatpush3.bf16.msra.mxu0 %v2990_v11  ;;  %v3040_v3 = vpack.c.bf16 %v2570_v2, %v2569_v0  ;;  %v2580_v36 = vld [vmem:[%s3795_s5 + $0x18] sm:$0xff] }
  0x18   : > { %s2647_s19 = sshll.u32 %s314_s12, 4  ;;  %3003 = vmatprep.subr.bf16.mxu0 %v3002_v19  ;;  %v2588_v45 = vld [vmem:[%s3792_s2 + $0x58] sm:$0xff]  ;;  %s3740_s12 = scalar_lea.hbm %s3797_s7, %s2649_s30 }
  0x19   : > { %s326_s22 = scalar_lea.vmem %s3791_s1, %s2647_s19  ;;  %s320_s8 = scalar_lea.vmem %s3790_s0, %s2647_s19  ;;  %v2594_v0 = vld [vmem:[%s3793_s3 + $0x58] sm:$0xff] }
  0x1a   : > { %v3443_v12 = vld [vmem:[%s326_s22] sm:$0xff]  ;;  %v3451_v14 = vld [vmem:[%s326_s22 + $0x8] sm:$0xff]  ;;  %v3074_v2 = vpack.c.bf16 %v2594_v0, %v2593_v63  ;;  %s2538_s19 = sshll.u32 %s309_s18, 4 }
  0x1b   : > { %v3445_v13 = vld [vmem:[%s320_s8] sm:$0xff]  ;;  %2789 = vmatprep.mubr.msk.f32.mxu1 %vm339_vm0, %v3443_v12  ;;  %v3453_v15 = vld [vmem:[%s320_s8 + $0x8] sm:$0xff]  ;;  %s311_s22 = scalar_lea.vmem [#allocation2], %s2538_s19  ;;  %s3239_s19 = scalar_lea.vmem %s3238_s17, 512 }
  0x1c   : > { %2778 = vmatprep.mubr.msk.f32.mxu0 %vm339_vm0, %v3445_v13  ;;  %2790 = vmatmul.mubr.msk.f32.vlgmr.msra.gmra.mrb[0].mxu1 %vm339_vm0, %v3451_v14  ;;  %v2626_v63 = vld [vmem:[%s3794_s4 + $0x68] sm:$0xff]  ;;  %s2442_s23 = sshll.u32 %s311_s22, 4  ;;  %s3735_s23 = int_to_ptr.vmem [resolvable:$true] %s2442_s23 }
  0x1d   : > { %2779 = vmatmul.mubr.msk.f32.vlgmr.msra.gmra.mrb[0].mxu0 %vm339_vm0, %v3453_v15  ;;  %s3233_s27 = scalar_lea.vmem %s3735_s23, 256  ;;  %p3240_p1 = scmp.lt.s32.totalorder %s3735_s23, %s3238_s17 }
  0x1e   : > { %2800 = vmatprep.mubr.msk.f32.mxu0 %vm339_vm0, %v3443_v12  ;;  %3005 = vmatpush3.bf16.msra.mxu0 %v3002_v19  ;;  %p3234_p12 = scmp.ne.s32.totalorder %s3735_s23, %s3233_s27  ;;  %p3241_p2 = scmp.lt.s32.totalorder %s3239_s19, %s3233_s27 }
  0x1f   : > { %3007 = vmatprep.subr.bf16.mxu0 %v3006_v21 }
  0x20   : > { %p3235_p13 = pnand %p3234_p12, %p3396_p4  ;;  %p3242_p3 = por %p3241_p2, %p3240_p1 }
  0x22   : > { %3009 = vmatpush3.bf16.msra.mxu0 %v3006_v21  ;;  %p3236_p0 = pneg %p3235_p13 }
  0x23   : > { %3029 = vmatprep.subr.bf16.mxu0 %v3028_v38 }
  0x24   : > { %p3243_p5 = pnand %p3242_p3, %p3236_p0 }
  0x25   : > { %2801 = vmatmul.mubr.msk.f32.vlgmr.msra.gmra.mrb[2].mxu0 %vm339_vm0, %v3451_v14 }
  0x26   : > { %2836 = vmatprep.mubr.msk.f32.mxu0 %vm339_vm0, %v3443_v12  ;;  %3031 = vmatpush3.bf16.msra.mxu0 %v3028_v38  ;;  %v780_v38 = vld [vmem:[%s3795_s5] sm:$0xff] }
  0x27   : > { %3033 = vmatprep.subr.bf16.mxu0 %v3032_v43 }
  0x2a   : > { %3035 = vmatpush3.bf16.msra.mxu0 %v3032_v43 }
  0x2d   : > { %2837 = vmatmul.mubr.msk.f32.vlgmr.msra.gmra.mrb[4].mxu0 %vm339_vm0, %v3451_v14 }
  0xef   : > { %v2791_v22 = vpop.f32.mrb[0].mxu1 }
  0xf0   : > { %v497_v23 = vpop.f32.mrb[1].mxu1  ;;  %v2780_v25 = vpop.f32.mrb[0].mxu0 }
  0xf1   : > { %v3010_v26 = vpack.c.bf16 %v2791_v22, %v497_v23  ;;  %v412_v27 = vpop.f32.mrb[1].mxu0 }
  0xf2   : > { %2807 = vmatprep.mubr.msk.f32.mxu1 %vm585_vm1, %v412_v27 }
  0xf3   : > { %3012 = vmatprep.subr.msk.bf16.mxu1 %vm3479_vm2, %v3010_v26 }
  0xf4   : > { %3015 = vmatpush3.bf16.xpose.msk.msra.mxu1 %vm3479_vm2, %v3010_v26 }
  0xf8   : > { %v2802_v39 = vpop.f32.mrb[2].mxu0 }
  0xf9   : > { %v576_v42 = vpop.f32.mrb[3].mxu0 }
  0xfa   : > { %v3016_v44 = vpack.c.bf16 %v2802_v39, %v576_v42  ;;  %v781_v39 = vld [vmem:[%s3795_s5 + $0x8] sm:$0xff] }
  0xfb   : > { %2808 = vmatmul.mubr.msk.f32.vlgmr.msra.gmra.mrb[2].mxu1 %vm585_vm1, %v2780_v25  ;;  %v3058_v40 = vpack.c.bf16 %v781_v39, %v780_v38  ;;  %v2586_v42 = vld [vmem:[%s3792_s2 + $0x48] sm:$0xff]  ;;  %v2609_v39 = vld [vmem:[%s3795_s5 + $0x20] sm:$0xff] }
  0xfc   : > { %3017 = vmatprep.subr.bf16.mxu1 %v3016_v44  ;;  %v3062_v43 = vpack.c.bf16 %v2586_v42, %v2585_v41  ;;  %v2619_v42 = vld [vmem:[%s3793_s3 + $0x60] sm:$0xff] }
  0xfd   : > { %3019 = vmatpush3.bf16.msra.mxu1 %v3016_v44  ;;  %v2587_v44 = vld [vmem:[%s3792_s2 + $0x50] sm:$0xff] }
  0xfe   : > { %3021 = vmatprep.subr.bf16.mxu1 %v3020_v47  ;;  %v3066_v46 = vpack.c.bf16 %v2588_v45, %v2587_v44  ;;  %v2613_v44 = vld [vmem:[%s3792_s2 + $0x60] sm:$0xff]  ;;  %v2614_v45 = vld [vmem:[%s3792_s2 + $0x68] sm:$0xff] }
 0x100   : > { %v2838_v59 = vpop.f32.mrb[4].mxu0 }
 0x101   : > { %v933_v60 = vpop.f32.mrb[5].mxu0 }
 0x102   : > { %v3044_v61 = vpack.c.bf16 %v2838_v59, %v933_v60 }
 0x104   : > { %3046 = vmatprep.subr.msk.bf16.mxu0 %vm3479_vm2, %v3044_v61 }
 0x105   : > { %3049 = vmatpush3.bf16.xpose.msk.msra.mxu0 %vm3479_vm2, %v3044_v61 }
 0x1ce   : > { %v2809_v30 = vpop.f32.mrb[2].mxu1 }
 0x1cf   : > { %v664_v31 = vpop.f32.mrb[3].mxu1  ;;  %v676_v34 = vsel %vm334_vm3, %v2809_v30, -inf }
 0x1d0   : > { %v675_v32 = vsel %vm334_vm3, %v664_v31, -inf  ;;  %v680_v35 = vsel %vm585_vm1, %v676_v34, -inf }
 0x1d1   : > { %v677_v33 = vsel %vm585_vm1, %v675_v32, -inf }
 0x1d2   : > { %678 = vmax.xlane.f32.xlu0 %v677_v33 }
 0x1d6   : > { %681 = vmax.xlane.f32.xlu0 %v680_v35  ;;  %v2579_v35 = vld [vmem:[%s3795_s5 + $0x10] sm:$0xff] }
 0x1d7   : > { %v3054_v37 = vpack.c.bf16 %v2580_v36, %v2579_v35 }
 0x1d9   : > { %3055 = vmatprep.subr.bf16.mxu0 %v3054_v37 }
 0x25f   : > { %v679_v48 = vpop.xlane.xlu0 %678 }
 0x260   : > { %v683_v49 = vsub.f32 %v675_v32, %v679_v48 }
 0x262   : > { %v685_v50 = vmul.f32 1.442695, %v683_v49 }
 0x263   : > { %v682_v51 = vpop.xlane.xlu0 %681 }
 0x264   : > { %3201 = vpow2.f32 %v685_v50  ;;  %v684_v52 = vsub.f32 %v676_v34, %v682_v51 }
 0x266   : > { %v687_v53 = vmul.f32 1.442695, %v684_v52 }
 0x268   : > { %3203 = vpow2.f32 %v687_v53  ;;  %v2591_v53 = vld [vmem:[%s3793_s3 + $0x40] sm:$0xff] }
 0x26e   : > { %v3202_v54 = vpop.eup %3201 }
 0x26f   : > { %2814 = vmatprep.mubr.msk.f32.mxu1 %vm585_vm1, %v3202_v54  ;;  %v689_v32 = vsel %vm585_vm1, %v3202_v54, 0.0  ;;  %v2592_v54 = vld [vmem:[%s3793_s3 + $0x48] sm:$0xff] }
 0x270   : > { %v3070_v60 = vpack.c.bf16 %v2592_v54, %v2591_v53  ;;  %v2621_v53 = vld [vmem:[%s3793_s3 + $0x70] sm:$0xff]  ;;  %v2622_v54 = vld [vmem:[%s3793_s3 + $0x78] sm:$0xff] }
 0x272   : > { %v3204_v58 = vpop.eup %3203 }
 0x273   : > { %2815 = vmatmul.mubr.msk.f32.vlgmr.msra.gmra.mrb[4].mxu1 %vm585_vm1, %v3204_v58  ;;  %v692_v34 = vsel %vm585_vm1, %v3204_v58, 0.0 }
 0x274   : > { %3023 = vmatpush3.bf16.msra.mxu1 %v3020_v47  ;;  %2825 = vmatprep.mubr.msk.f32.mxu1 %vm339_vm0, %v3445_v13 }
 0x275   : > { %3025 = vmatprep.subr.bf16.mxu1 %v3024_v57 }
 0x278   : > { %3027 = vmatpush3.bf16.msra.mxu1 %v3024_v57 }
 0x279   : > { %3037 = vmatprep.subr.bf16.mxu1 %v3036_v1 }
 0x27b   : > { %2826 = vmatmul.mubr.msk.f32.vlgmr.msra.gmra.mrb[6].mxu1 %vm339_vm0, %v3453_v15 }
 0x27c   : > { %2847 = vmatprep.mubr.msk.f32.mxu1 %vm339_vm0, %v3443_v12  ;;  %3039 = vmatpush3.bf16.msra.mxu1 %v3036_v1 }
 0x27d   : > { %3041 = vmatprep.subr.bf16.mxu1 %v3040_v3 }
 0x280   : > { %3043 = vmatpush3.bf16.msra.mxu1 %v3040_v3 }
 0x283   : > { %2848 = vmatmul.mubr.msk.f32.vlgmr.msra.gmra.mrb[8].mxu1 %vm339_vm0, %v3451_v14 }
 0x346   : > { %v3550_v4 = vpop.f32.mrb[4].mxu1 }
 0x347   : > { %v3552_v5 = vpop.f32.mrb[5].mxu1 }
 0x34e   : > { %v2827_v6 = vpop.f32.mrb[6].mxu1 }
 0x34f   : > { %v853_v7 = vpop.f32.mrb[7].mxu1 }
 0x350   : > { %2854 = vmatprep.mubr.msk.f32.mxu0 %vm585_vm1, %v853_v7  ;;  %v2599_v7 = vld [vmem:[%s3794_s4 + $0x50] sm:$0xff] }
 0x351   : > { %2855 = vmatmul.mubr.msk.f32.vlgmr.msra.gmra.mrb[6].mxu0 %vm585_vm1, %v2827_v6  ;;  %v2598_v6 = vld [vmem:[%s3794_s4 + $0x48] sm:$0xff] }
 0x352   : > { %3057 = vmatpush3.bf16.msra.mxu0 %v3054_v37 }
 0x353   : > { %3059 = vmatprep.subr.bf16.mxu0 %v3058_v40 }
 0x356   : > { %v2849_v18 = vpop.f32.mrb[8].mxu1 }
 0x357   : > { %v1013_v19 = vpop.f32.mrb[9].mxu1 }
 0x358   : > { %v3050_v20 = vpack.c.bf16 %v2849_v18, %v1013_v19 }
 0x35a   : > { %3051 = vmatprep.subr.bf16.mxu1 %v3050_v20 }
 0x35b   : > { %3053 = vmatpush3.bf16.msra.mxu1 %v3050_v20 }
 0x35c   : > { %3063 = vmatprep.subr.bf16.mxu1 %v3062_v43 }
 0x424   : > { %v2856_v8 = vpop.f32.mrb[6].mxu0 }
 0x425   : > { %v1100_v9 = vpop.f32.mrb[7].mxu0  ;;  %v1110_v16 = vsel %vm334_vm3, %v2856_v8, -inf }
 0x426   : > { %v1109_v10 = vsel %vm334_vm3, %v1100_v9, -inf  ;;  %v1114_v17 = vsel %vm585_vm1, %v1110_v16, -inf  ;;  %v2600_v9 = vld [vmem:[%s3794_s4 + $0x58] sm:$0xff] }
 0x427   : > { %v1111_v11 = vsel %vm585_vm1, %v1109_v10, -inf }
 0x428   : > { %1112 = vmax.xlane.f32.xlu1 %v1111_v11 }
 0x42c   : > { %1115 = vmax.xlane.f32.xlu1 %v1114_v17 }
 0x4b5   : > { %v1113_v21 = vpop.xlane.xlu1 %1112 }
 0x4b6   : > { %v1117_v22 = vsub.f32 %v1109_v10, %v1113_v21  ;;  %v3082_v10 = vpack.c.bf16 %v2600_v9, %v2599_v7 }
 0x4b8   : > { %v1119_v23 = vmul.f32 1.442695, %v1117_v22 }
 0x4b9   : > { %v1116_v25 = vpop.xlane.xlu1 %1115 }
 0x4ba   : > { %3205 = vpow2.f32 %v1119_v23  ;;  %v1118_v26 = vsub.f32 %v1110_v16, %v1116_v25 }
 0x4bc   : > { %v1121_v27 = vmul.f32 1.442695, %v1118_v26 }
 0x4be   : > { %3207 = vpow2.f32 %v1121_v27 }
 0x4c4   : > { %v3206_v28 = vpop.eup %3205 }
 0x4c5   : > { %2861 = vmatprep.mubr.msk.f32.mxu1 %vm585_vm1, %v3206_v28  ;;  %v1123_v30 = vsel %vm585_vm1, %v3206_v28, 0.0 }
 0x4c6   : > { %1124 = vadd.xlane.f32.xlu0 %v1123_v30 }
 0x4c8   : > { %v3208_v31 = vpop.eup %3207 }
 0x4c9   : > { %2862 = vmatmul.mubr.msk.f32.vlgmr.msra.gmra.mrb[10].mxu1 %vm585_vm1, %v3208_v31  ;;  %v1126_v33 = vsel %vm585_vm1, %v3208_v31, 0.0 }
 0x4ca   : > { %690 = vadd.xlane.f32.xlu0 %v689_v32  ;;  %1127 = vadd.xlane.f32.xlu1 %v1126_v33 }
 0x4cb   : > { %2886 = vmatprep.mubr.msk.f32.mxu1 %vm339_vm0, %v3445_v13  ;;  %3065 = vmatpush3.bf16.msra.mxu1 %v3062_v43  ;;  %v2620_v43 = vld [vmem:[%s3793_s3 + $0x68] sm:$0xff] }
 0x4cc   : > { %3067 = vmatprep.subr.bf16.mxu1 %v3066_v46 }
 0x4ce   : > { %693 = vadd.xlane.f32.xlu1 %v692_v34 }
 0x4cf   : > { %3069 = vmatpush3.bf16.msra.mxu1 %v3066_v46  ;;  %v3100_v46 = vpack.c.bf16 %v2614_v45, %v2613_v44 }
 0x4d2   : > { %2887 = vmatmul.mubr.msk.f32.vlgmr.msra.gmra.mrb[12].mxu1 %vm339_vm0, %v3453_v15 }
 0x4d3   : > { %2908 = vmatprep.mubr.msk.f32.mxu1 %vm339_vm0, %v3443_v12 }
 0x553   : > { %v1125_v47 = vpop.xlane.xlu0 %1124 }
 0x554   : > { %3209 = vrcp.f32 %v1125_v47  ;;  %v2615_v47 = vld [vmem:[%s3792_s2 + $0x70] sm:$0xff] }
 0x557   : > { %v691_v48 = vpop.xlane.xlu0 %690  ;;  %v1128_v49 = vpop.xlane.xlu1 %1127 }
 0x558   : > { %3211 = vrcp.f32 %v691_v48  ;;  %v2616_v48 = vld [vmem:[%s3792_s2 + $0x78] sm:$0xff] }
 0x559   : > { %3213 = vrcp.f32 %v1128_v49  ;;  %v3104_v49 = vpack.c.bf16 %v2616_v48, %v2615_v47 }
 0x55b   : > { %v694_v50 = vpop.xlane.xlu1 %693 }
 0x55c   : > { %3215 = vrcp.f32 %v694_v50 }
 0x55e   : > { %v3210_v51 = vpop.eup %3209 }
 0x562   : > { %v3212_v55 = vpop.eup %3211 }
 0x563   : > { %v3214_v57 = vpop.eup %3213  ;;  %v778_v61 = vmul.f32 %v3212_v55, %v3552_v5 }
 0x566   : > { %v3216_v62 = vpop.eup %3215 }
 0x567   : > { %v779_v1 = vmul.f32 %v3216_v62, %v3550_v4  ;;  %v2597_v4 = vld [vmem:[%s3794_s4 + $0x40] sm:$0xff] }
 0x568   : > { %v3078_v8 = vpack.c.bf16 %v2598_v6, %v2597_v4  ;;  %v2625_v62 = vld [vmem:[%s3794_s4 + $0x60] sm:$0xff] }
 0x569   : > { %v3116_v0 = vpack.c.bf16 %v2626_v63, %v2625_v62 }
 0x56a   : > { %3079 = vmatprep.subr.bf16.mxu1 %v3078_v8 }
 0x56b   : > { %3081 = vmatpush3.bf16.msra.mxu1 %v3078_v8 }
 0x56c   : > { %3083 = vmatprep.subr.bf16.mxu1 %v3082_v10 }
 0x56f   : > { %3085 = vmatpush3.bf16.msra.mxu1 %v3082_v10 }
 0x572   : > { %2909 = vmatmul.mubr.msk.f32.vlgmr.msra.gmra.mrb[14].mxu1 %vm339_vm0, %v3451_v14 }
 0x59c   : > { %v2863_v52 = vpop.f32.mrb[10].mxu1 }
 0x59d   : > { %v1201_v56 = vpop.f32.mrb[11].mxu1  ;;  %v1213_v59 = vmul.f32 %v3214_v57, %v2863_v52 }
 0x59e   : > { %v1212_v58 = vmul.f32 %v3210_v51, %v1201_v56 }
 0x5a0   : > { %2868 = vmatprep.mubr.msk.f32.mxu0 %vm585_vm1, %v1212_v58 }
 0x5a1   : > { %2869 = vmatmul.mubr.msk.f32.vlgmr.msra.gmra.mrb[8].mxu0 %vm585_vm1, %v1213_v59  ;;  %v3112_v59 = vpack.c.bf16 %v2622_v54, %v2621_v53 }
 0x5a2   : > { %3061 = vmatpush3.bf16.msra.mxu0 %v3058_v40  ;;  %2875 = vmatprep.mubr.msk.f32.mxu0 %vm585_vm1, %v778_v61  ;;  %v2610_v40 = vld [vmem:[%s3795_s5 + $0x28] sm:$0xff] }
 0x5a3   : > { %3071 = vmatprep.subr.bf16.mxu0 %v3070_v60  ;;  %v3096_v41 = vpack.c.bf16 %v2610_v40, %v2609_v39  ;;  %v2641_v39 = vld [vmem:[%s3796_s6] ss:$0 sm:$0xff] }
 0x5a5   : > { %v2888_v3 = vpop.f32.mrb[12].mxu1 }
 0x5a6   : > { %v1450_v5 = vpop.f32.mrb[13].mxu1 }
 0x5a9   : > { %2876 = vmatmul.mubr.msk.f32.vlgmr.msra.gmra.mrb[8].mxu0 %vm585_vm1, %v779_v1  ;;  %v2628_v1 = vld [vmem:[%s3794_s4 + $0x78] sm:$0xff] }
 0x5aa   : > { %3073 = vmatpush3.bf16.msra.mxu0 %v3070_v60  ;;  %2897 = vmatprep.mubr.msk.f32.mxu0 %vm339_vm0, %v3443_v12 }
 0x5ab   : > { %3075 = vmatprep.subr.bf16.mxu0 %v3074_v2 }
 0x5ae   : > { %3077 = vmatpush3.bf16.msra.mxu0 %v3074_v2 }
 0x5b1   : > { %2898 = vmatmul.mubr.msk.f32.vlgmr.msra.gmra.mrb[10].mxu0 %vm339_vm0, %v3451_v14 }
 0x5b2   : > { %2915 = vmatprep.mubr.msk.f32.mxu0 %vm585_vm1, %v1450_v5 }
 0x645   : > { %v2910_v25 = vpop.f32.mrb[14].mxu1 }
 0x646   : > { %v1610_v26 = vpop.f32.mrb[15].mxu1 }
 0x647   : > { %v3092_v27 = vpack.c.bf16 %v2910_v25, %v1610_v26 }
 0x649   : > { %3093 = vmatprep.subr.bf16.mxu1 %v3092_v27 }
 0x64a   : > { %3095 = vmatpush3.bf16.msra.mxu1 %v3092_v27  ;;  %v2637_v27 = vld [vmem:[%s3795_s5 + $0x30] sm:$0xff] }
 0x64b   : > { %3101 = vmatprep.subr.bf16.mxu1 %v3100_v46 }
 0x684   : > { %v2899_v11 = vpop.f32.mrb[10].mxu0 }
 0x685   : > { %v1530_v16 = vpop.f32.mrb[11].mxu0 }
 0x686   : > { %v3086_v17 = vpack.c.bf16 %v2899_v11, %v1530_v16 }
 0x688   : > { %3088 = vmatprep.subr.msk.bf16.mxu0 %vm3479_vm2, %v3086_v17 }
 0x689   : > { %3091 = vmatpush3.bf16.xpose.msk.msra.mxu0 %vm3479_vm2, %v3086_v17 }
 0x68a   : > { %3097 = vmatprep.subr.bf16.mxu0 %v3096_v41 }
 0x690   : > { %2916 = vmatmul.mubr.msk.f32.vlgmr.msra.gmra.mrb[12].mxu0 %vm585_vm1, %v2888_v3 }
 0x691   : > { %3099 = vmatpush3.bf16.msra.mxu0 %v3096_v41 }
 0x763   : > { %v2917_v18 = vpop.f32.mrb[12].mxu0 }
 0x764   : > { %v1707_v19 = vsel %vm334_vm3, %v2917_v18, -inf  ;;  %v1697_v20 = vpop.f32.mrb[13].mxu0 }
 0x765   : > { %v1706_v21 = vsel %vm334_vm3, %v1697_v20, -inf  ;;  %v1711_v22 = vsel %vm585_vm1, %v1707_v19, -inf }
 0x766   : > { %1712 = vmax.xlane.f32.xlu1 %v1711_v22  ;;  %v1708_v23 = vsel %vm585_vm1, %v1706_v21, -inf }
 0x767   : > { %1709 = vmax.xlane.f32.xlu0 %v1708_v23 }
 0x7f3   : > { %v1713_v28 = vpop.xlane.xlu1 %1712 }
 0x7f4   : > { %v1715_v30 = vsub.f32 %v1707_v19, %v1713_v28  ;;  %v1710_v31 = vpop.xlane.xlu0 %1709  ;;  %v2638_v28 = vld [vmem:[%s3795_s5 + $0x38] sm:$0xff] }
 0x7f5   : > { %v1714_v32 = vsub.f32 %v1706_v21, %v1710_v31 }
 0x7f6   : > { %v1718_v33 = vmul.f32 1.442695, %v1715_v30  ;;  %v3134_v30 = vpack.c.bf16 %v2638_v28, %v2637_v27 }
 0x7f7   : > { %v1716_v34 = vmul.f32 1.442695, %v1714_v32 }
 0x7f8   : > { %3217 = vpow2.f32 %v1718_v33 }
 0x7f9   : > { %3219 = vpow2.f32 %v1716_v34 }
 0x802   : > { %v3218_v35 = vpop.eup %3217 }
 0x803   : > { %v3220_v36 = vpop.eup %3219  ;;  %v1723_v37 = vsel %vm585_vm1, %v3218_v35, 0.0 }
 0x804   : > { %1724 = vadd.xlane.f32.xlu1 %v1723_v37  ;;  %2922 = vmatprep.mubr.msk.f32.mxu1 %vm585_vm1, %v3220_v36  ;;  %v1720_v38 = vsel %vm585_vm1, %v3220_v36, 0.0 }
 0x805   : > { %2923 = vmatmul.mubr.msk.f32.vlgmr.msra.gmra.mrb[16].mxu1 %vm585_vm1, %v3218_v35  ;;  %1721 = vadd.xlane.f32.xlu0 %v1720_v38 }
 0x806   : > { %2940 = vmatprep.mubr.msk.f32.mxu1 %vm339_vm0, %v3445_v13  ;;  %v3108_v13 = vpack.c.bf16 %v2620_v43, %v2619_v42  ;;  %3103 = vmatpush3.bf16.msra.mxu1 %v3100_v46 }
 0x807   : > { %3105 = vmatprep.subr.bf16.mxu1 %v3104_v49 }
 0x808   : > { %3109 = vmatprep.subr.bf16.mxu0 %v3108_v13 }
 0x80a   : > { %3107 = vmatpush3.bf16.msra.mxu1 %v3104_v49 }
 0x80b   : > { %3117 = vmatprep.subr.bf16.mxu1 %v3116_v0 }
 0x80d   : > { %2941 = vmatmul.mubr.msk.f32.vlgmr.msra.gmra.mrb[18].mxu1 %vm339_vm0, %v3453_v15 }
 0x80e   : > { %2962 = vmatprep.mubr.msk.f32.mxu1 %vm339_vm0, %v3443_v12  ;;  %3119 = vmatpush3.bf16.msra.mxu1 %v3116_v0 }
 0x891   : > { %v1725_v51 = vpop.xlane.xlu1 %1724 }
 0x892   : > { %v1722_v50 = vpop.xlane.xlu0 %1721 }
 0x893   : > { %3221 = vrcp.f32 %v1722_v50 }
 0x894   : > { %3223 = vrcp.f32 %v1725_v51 }
 0x89d   : > { %v3222_v55 = vpop.eup %3221 }
 0x89e   : > { %v3224_v57 = vpop.eup %3223 }
 0x8d8   : > { %v2924_v52 = vpop.f32.mrb[16].mxu1 }
 0x8d9   : > { %v1798_v56 = vpop.f32.mrb[17].mxu1  ;;  %v1810_v58 = vmul.f32 %v3224_v57, %v2924_v52 }
 0x8da   : > { %v1809_v15 = vmul.f32 %v3222_v55, %v1798_v56 }
 0x8dc   : > { %2929 = vmatprep.mubr.msk.f32.mxu0 %vm585_vm1, %v1809_v15 }
 0x8dd   : > { %2930 = vmatmul.mubr.msk.f32.vlgmr.msra.gmra.mrb[8].mxu0 %vm585_vm1, %v1810_v58 }
 0x8de   : > { %3111 = vmatpush3.bf16.msra.mxu0 %v3108_v13  ;;  %2951 = vmatprep.mubr.msk.f32.mxu0 %vm339_vm0, %v3443_v12  ;;  %v2627_v12 = vld [vmem:[%s3794_s4 + $0x70] sm:$0xff] }
 0x8df   : > { %3113 = vmatprep.subr.bf16.mxu0 %v3112_v59  ;;  %v3120_v2 = vpack.c.bf16 %v2628_v1, %v2627_v12 }
 0x8e0   : > { %v2942_v60 = vpop.f32.mrb[18].mxu1 }
 0x8e1   : > { %v1968_v61 = vpop.f32.mrb[19].mxu1  ;;  %3121 = vmatprep.subr.bf16.mxu1 %v3120_v2 }
 0x8e2   : > { %3115 = vmatpush3.bf16.msra.mxu0 %v3112_v59  ;;  %3123 = vmatpush3.bf16.msra.mxu1 %v3120_v2 }
 0x8e5   : > { %2952 = vmatmul.mubr.msk.f32.vlgmr.msra.gmra.mrb[14].mxu0 %vm339_vm0, %v3451_v14  ;;  %2963 = vmatmul.mubr.msk.f32.vlgmr.msra.gmra.mrb[20].mxu1 %vm339_vm0, %v3451_v14 }
 0x8e6   : > { %2969 = vmatprep.mubr.msk.f32.mxu0 %vm585_vm1, %v1968_v61 }
 0x9b8   : > { %v2953_v3 = vpop.f32.mrb[14].mxu0  ;;  %v2964_v11 = vpop.f32.mrb[20].mxu1 }
 0x9b9   : > { %v2048_v5 = vpop.f32.mrb[15].mxu0  ;;  %v2128_v16 = vpop.f32.mrb[21].mxu1 }
 0x9ba   : > { %v3124_v4 = vpack.c.bf16 %v2953_v3, %v2048_v5  ;;  %v3130_v24 = vpack.c.bf16 %v2964_v11, %v2128_v16 }
 0x9bc   : > { %3126 = vmatprep.subr.msk.bf16.mxu0 %vm3479_vm2, %v3124_v4  ;;  %3131 = vmatprep.subr.bf16.mxu1 %v3130_v24 }
 0x9bd   : > { %3129 = vmatpush3.bf16.xpose.msk.msra.mxu0 %vm3479_vm2, %v3124_v4  ;;  %3133 = vmatpush3.bf16.msra.mxu1 %v3130_v24 }
 0x9be   : > { %3135 = vmatprep.subr.bf16.mxu0 %v3134_v30 }
 0x9c4   : > { %2970 = vmatmul.mubr.msk.f32.vlgmr.msra.gmra.mrb[16].mxu0 %vm585_vm1, %v2942_v60 }
 0x9c5   : > { %3137 = vmatpush3.bf16.msra.mxu0 %v3134_v30 }
 0xa97   : > { %v2971_v6 = vpop.f32.mrb[16].mxu0 }
 0xa98   : > { %v2225_v7 = vsel %vm334_vm3, %v2971_v6, -inf  ;;  %v2215_v8 = vpop.f32.mrb[17].mxu0 }
 0xa99   : > { %v2224_v9 = vsel %vm334_vm3, %v2215_v8, -inf  ;;  %v2229_v14 = vsel %vm585_vm1, %v2225_v7, -inf }
 0xa9a   : > { %2230 = vmax.xlane.f32.xlu1 %v2229_v14  ;;  %v2226_v10 = vsel %vm585_vm1, %v2224_v9, -inf }
 0xa9b   : > { %2227 = vmax.xlane.f32.xlu0 %v2226_v10 }
 0xb27   : > { %v2231_v17 = vpop.xlane.xlu1 %2230 }
 0xb28   : > { %v2233_v18 = vsub.f32 %v2225_v7, %v2231_v17  ;;  %v2228_v19 = vpop.xlane.xlu0 %2227 }
 0xb29   : > { %v2232_v20 = vsub.f32 %v2224_v9, %v2228_v19 }
 0xb2a   : > { %v2236_v21 = vmul.f32 1.442695, %v2233_v18 }
 0xb2b   : > { %v2234_v22 = vmul.f32 1.442695, %v2232_v20 }
 0xb2c   : > { %3225 = vpow2.f32 %v2236_v21 }
 0xb2d   : > { %3227 = vpow2.f32 %v2234_v22 }
 0xb36   : > { %v3226_v29 = vpop.eup %3225 }
 0xb37   : > { %v3228_v23 = vpop.eup %3227  ;;  %v2241_v25 = vsel %vm585_vm1, %v3226_v29, 0.0 }
 0xb38   : > { %2242 = vadd.xlane.f32.xlu1 %v2241_v25  ;;  %2976 = vmatprep.mubr.msk.f32.mxu1 %vm585_vm1, %v3228_v23  ;;  %v2238_v26 = vsel %vm585_vm1, %v3228_v23, 0.0 }
 0xb39   : > { %2977 = vmatmul.mubr.msk.f32.vlgmr.msra.gmra.mrb[22].mxu1 %vm585_vm1, %v3226_v29  ;;  %2239 = vadd.xlane.f32.xlu0 %v2238_v26 }
 0xbc5   : > { %v2243_v32 = vpop.xlane.xlu1 %2242 }
 0xbc6   : > { %v2240_v31 = vpop.xlane.xlu0 %2239 }
 0xbc7   : > { %3229 = vrcp.f32 %v2240_v31 }
 0xbc8   : > { %3231 = vrcp.f32 %v2243_v32 }
 0xbd1   : > { %v3230_v34 = vpop.eup %3229 }
 0xbd2   : > { %v3232_v36 = vpop.eup %3231 }
 0xc0c   : > { %v2978_v33 = vpop.f32.mrb[22].mxu1 }
 0xc0d   : > { %v2316_v35 = vpop.f32.mrb[23].mxu1  ;;  %v2328_v38 = vmul.f32 %v3232_v36, %v2978_v33 }
 0xc0e   : > { %v2327_v37 = vmul.f32 %v3230_v34, %v2316_v35 }
 0xc10   : > { %2983 = vmatprep.mubr.msk.f32.mxu0 %vm585_vm1, %v2327_v37 }
 0xc11   : > { %2984 = vmatmul.mubr.msk.f32.vlgmr.msra.gmra.mrb[8].mxu0 %vm585_vm1, %v2328_v38 }
 0xce4   : > { %v2985_v40 = vpop.f32.mrb[8].mxu0 }
 0xce5   : > { %v2423_v41 = vadd.f32 %v2985_v40, %v2641_v39  ;;  %v2404_v42 = vpop.f32.mrb[9].mxu0 }
 0xce6   : > { %v2422_v43 = vadd.f32 %v2641_v39, %v2404_v42 }
 0xce7   : > { %2425 = vst.msk [vmem:[%s311_s22 + $0x8] sm:$0xff] %vm339_vm0, %v2423_v41 }
 0xce8   : > { %2424 = vst.msk [vmem:[%s311_s22] sm:$0xff] %vm339_vm0, %v2422_v43 }
 0xce9   : > { %3246 = shalt.err (!%p3243_p5)
}
 0xcea   : > { %s3247_s18 = scalar_lea.hbm %s3740_s12, 256  ;;  %s3251_s22 = scalar_lea.hbm %s3797_s7, 512 }
 0xceb   : > { %p3248_p6 = scmp.ne.s32.totalorder %s3740_s12, %s3247_s18  ;;  %p3252_p10 = scmp.lt.u32.totalorder %s3740_s12, %s3797_s7 }
 0xcec   : > { %p3253_p11 = scmp.lt.u32.totalorder %s3251_s22, %s3247_s18  ;;  %p3255_p13 = scmp.lt.u32.totalorder %s3247_s18, %s3740_s12 }
 0xced   : > { %p3249_p7 = pnand %p3248_p6, %p3396_p4 }
 0xcee   : > { %p3254_p12 = por %p3253_p11, %p3252_p10 }
 0xcef   : > { %p3250_p9 = pneg %p3249_p7 }
 0xcf0   : > { %p3256_p0 = por %p3255_p13, %p3254_p12 }
 0xcf2   : > { %p3257_p1 = pnand %p3256_p0, %p3250_p9 }
 0xcf4   : > { %3260 = shalt.err (!%p3257_p1)
}
 0xcf5   : > { %s3314_s10 = smov 128   ;;  %s3315_s27 = smov 8  }
 0xcf6   : > { %3144 = dma.vmem_to_hbm [thread:$0]  (%p3396_p4), %s3735_s23, 256, %s3740_s12, %s3744_s15, %s3314_s10, %s3314_s10, %s3315_s27  }
 0xcf7 PF: > { %p3150_p2 = scmp.ge.s32.totalorder %s3311_s29, 2  ;;  %s2457_s16 = sand.u32 1, %s3291_s24  }
 0xcf8   : > { %s2458_s17 = scalar_lea.sflag [#allocation3], %s2457_s16 }
 0xcf9   : > { %p3147_p3 = pnand %p3150_p2, %p3403_p8 }
 0xcfb   : > { %3286 = dma.done.wait (!%p3147_p3), %s2458_s17, 256  }
 0xcfc   : > { %3288 = vsyncadd (!%p3147_p3), %s2458_s17, 4294967040  ;;  %s20_s29 = sadd.s32 1, %s3311_s29   ;;  %s3802_s24 = smov %s3295_s25 }
 0xcfd   : > { %p17_p5 = scmp.ge.s32.totalorder %s20_s29, 4   ;;  %s3803_s25 = smov %s3299_s26 }
 0xcfe   : > { %s3804_s26 = smov %s3409_s14  ;;  %s3805_s27 = smov %s3307_s28 }
 0xcff   : > { %s3806_s28 = smov %s3808_s9  ;;  %19 = sbr.rel (!%p17_p5) target bundleno = 4 (0x4), region = 98 }
 0xd06   :  { %2463 = vsyncpa [#allocation3], 1 }
 0xd07   :  { %2465 = vsyncpa [#allocation3 + $0x1], 1 }

</bundles_post_ra>
